<compile_context>
chip_gen: v6e
topology: v6e:2x2x1
jax: 0.10.0
libtpu: 0.0.40
codegen_flags: <defaults>
</compile_context>

<pallas_src>
import functools

import jax
import jax.numpy as jnp
from jax import lax
from jax.experimental import pallas as pl
from jax.experimental.pallas import tpu as pltpu


def _unet_down_kernel(u_ref, w_ref, o_ref, *, taps, lh, l_out, batch_block,
                      eps, neg_slope):
    """One grid step = `batch_block` batch elements.

    u_ref: (1, Cs, bb*Lh)      stride-phase de-interleaved input, batch folded into lanes
    w_ref: (C_out, taps*Cs)    tap-concatenated weight matrix (constant block index)
    o_ref: (bb, C_out, L_out)  output block in PyTorch NCL layout
    """
    cw = batch_block * lh - (taps - 1)   # merged-matmul column width

    # Tap-concatenated RHS built from the VMEM-resident tile (on-chip duplication only).
    if taps > 1:
        u_cat = jnp.concatenate(
            [u_ref[0, :, pl.ds(t, cw)] for t in range(taps)], axis=0)
    else:
        u_cat = u_ref[0, :, pl.ds(0, cw)]

    # One MXU matmul per grid step, f32 accumulation.
    y_cat = jnp.dot(w_ref[...], u_cat, preferred_element_type=jnp.float32)

    inv_n = jnp.float32(1.0 / l_out)
    for b in range(batch_block):                       # static, batch_block <= 4
        # Per-batch window of the conv result: columns [b*Lh, b*Lh + L_out).
        y = y_cat[:, b * lh:b * lh + l_out]            # (C_out, L_out) f32

        # InstanceNorm1d (no affine, biased variance): two-pass stats in f32.
        mean = jnp.sum(y, axis=1, keepdims=True) * inv_n
        yc = y - mean
        var = jnp.sum(yc * yc, axis=1, keepdims=True) * inv_n
        y_norm = yc * lax.rsqrt(var + eps)

        # LeakyReLU(0.2)
        out = jnp.where(y_norm >= 0.0, y_norm, neg_slope * y_norm)
        o_ref[b] = out.astype(o_ref.dtype)


def _pick_batch_block(N, Cs, Lh, C_out, L_out, taps, in_itemsize, out_itemsize,
                      vmem_budget=20 * 1024 * 1024):
    """Largest bb in {4,3,2,1} that divides N, keeps >= min(N,4) grid steps, fits VMEM."""
    def footprint(bb):
        cw = bb * Lh - (taps - 1)
        return (2 * Cs * bb * Lh * in_itemsize           # double-buffered input block
                + 2 * bb * C_out * L_out * out_itemsize  # double-buffered output block
                + 2 * C_out * taps * Cs * in_itemsize    # weight block
                + taps * Cs * cw * in_itemsize           # tap-concatenated RHS temp
                + 2 * C_out * cw * 4)                    # f32 matmul result + temps headroom
    min_steps = min(N, 4)   # >= 2 steps per TensorCore on v7x whenever the batch allows
    for bb in (4, 3, 2, 1):
        if N % bb == 0 and N // bb >= min_steps and footprint(bb) <= vmem_budget:
            return bb
    return 1


def unet_down_pallas(x, weight, *, stride=2, eps=1e-5, neg_slope=0.2,
                     use_bf16=True, out_dtype=None, batch_block=None):
    """x: (N, C_in, L) f32, weight: (C_out, C_in, K) -> (N, C_out, L_out) in NCL layout."""
    N, C_in, L = x.shape
    C_out, C_in_w, K = weight.shape
    assert C_in == C_in_w
    assert K % stride == 0, "tap decomposition assumes kernel_size % stride == 0"
    assert L >= K
    taps = K // stride
    L_out = (L - K) // stride + 1
    Lh = L // stride
    Cs = C_in * stride
    assert L_out + taps - 1 <= Lh

    compute_dtype = jnp.bfloat16 if use_bf16 else x.dtype
    out_dtype = x.dtype if out_dtype is None else out_dtype
    in_itemsize = jnp.dtype(compute_dtype).itemsize
    out_itemsize = jnp.dtype(out_dtype).itemsize

    if batch_block is None:
        batch_block = _pick_batch_block(N, Cs, Lh, C_out, L_out, taps,
                                        in_itemsize, out_itemsize)
    assert N % batch_block == 0
    bb = batch_block
    Nb = N // bb

    # --- layout glue (single pass; allow_input_fusion lets XLA fold it into the input DMA) ---
    # u[nb, ci*stride + p, b*Lh + m] = x[nb*bb + b, ci, m*stride + p]
    u = x[:, :, :stride * Lh].reshape(Nb, bb, C_in, Lh, stride)
    u = u.transpose(0, 2, 4, 1, 3).reshape(Nb, Cs, bb * Lh).astype(compute_dtype)
    # w_cat[co, t*Cs + ci*stride + p] = weight[co, ci, t*stride + p]
    w_cat = weight.reshape(C_out, C_in, taps, stride)
    w_cat = w_cat.transpose(0, 2, 1, 3).reshape(C_out, taps * Cs).astype(compute_dtype)

    kernel = functools.partial(_unet_down_kernel, taps=taps, lh=Lh, l_out=L_out,
                               batch_block=bb, eps=eps, neg_slope=neg_slope)

    cost = pl.CostEstimate(
        flops=2 * N * C_out * L_out * C_in * K + 10 * N * C_out * L_out,
        transcendentals=N * C_out,
        bytes_accessed=(N * Cs * Lh + C_out * taps * Cs) * in_itemsize
                       + N * C_out * L_out * out_itemsize,
    )

    cw = bb * Lh - (taps - 1)
    footprint = (2 * Cs * bb * Lh * in_itemsize
                 + 2 * bb * C_out * L_out * out_itemsize
                 + 2 * C_out * taps * Cs * in_itemsize
                 + taps * Cs * cw * in_itemsize
                 + 2 * C_out * cw * 4)
    vmem_limit = int(min(48 * 1024 * 1024, max(32 * 1024 * 1024, 2 * footprint)))

    return pl.pallas_call(
        kernel,
        out_shape=jax.ShapeDtypeStruct((N, C_out, L_out), out_dtype),
        grid_spec=pltpu.PrefetchScalarGridSpec(
            num_scalar_prefetch=0,
            grid=(Nb,),
            in_specs=[
                pl.BlockSpec((1, Cs, bb * Lh), lambda n: (n, 0, 0)),
                # constant block index -> weight DMA'd HBM->VMEM exactly once
                pl.BlockSpec((C_out, taps * Cs), lambda n: (0, 0)),
            ],
            out_specs=pl.BlockSpec((bb, C_out, L_out), lambda n: (n, 0, 0)),
        ),
        compiler_params=pltpu.CompilerParams(
            dimension_semantics=("parallel",),
            vmem_limit_bytes=vmem_limit,
            allow_input_fusion=[True, False],
        ),
        cost_estimate=cost,
    )(u, w_cat)


def _reference(x, weight, *, stride=2, eps=1e-5, neg_slope=0.2):
    """Pure-JAX reference matching PyTorch semantics (Conv1d pad=0 + InstanceNorm1d + LeakyReLU)."""
    y = lax.conv_general_dilated(
        x, weight, window_strides=(stride,), padding="VALID",
        dimension_numbers=("NCH", "OIH", "NCH"))
    mean = jnp.mean(y, axis=-1, keepdims=True)
    var = jnp.mean((y - mean) ** 2, axis=-1, keepdims=True)
    yn = (y - mean) / jnp.sqrt(var + eps)
    return jnp.where(yn >= 0, yn, neg_slope * yn)


if __name__ == "__main__":
    # Small shapes consistent with UNetDown(in_size=4, out_size=8): x is (N, C_in, L).
    # N=8 so the heuristic picks batch_block=2 -> 4 grid steps (exercises the batch fold).
    N, C_in, C_out, L, K, STRIDE = 8, 4, 8, 32, 4, 2

    key = jax.random.PRNGKey(0)
    kx, kw = jax.random.split(key)
    x = jax.random.normal(kx, (N, C_in, L), dtype=jnp.float32)
    fan_in = C_in * K
    bound = 1.0 / (fan_in ** 0.5)
    weight = jax.random.uniform(kw, (C_out, C_in, K), dtype=jnp.float32,
                                minval=-bound, maxval=bound)

    L_out = (L - K) // STRIDE + 1
    ref = _reference(x, weight, stride=STRIDE)

    # f32 MXU path: tight check against the pure-JAX reference.
    out_f32 = jax.block_until_ready(
        unet_down_pallas(x, weight, stride=STRIDE, use_bf16=False))
    assert out_f32.shape == ref.shape == (N, C_out, L_out)
    assert jnp.max(jnp.abs(out_f32 - ref)) < 1e-4

    # bf16 MXU path (default / fast): compare against a reference fed bf16-rounded operands,
    # isolating kernel correctness from the expected bf16 quantization of the inputs.
    out_bf16 = jax.block_until_ready(
        unet_down_pallas(x, weight, stride=STRIDE, use_bf16=True))
    x_bf = x.astype(jnp.bfloat16).astype(jnp.float32)
    w_bf = weight.astype(jnp.bfloat16).astype(jnp.float32)
    ref_bf = _reference(x_bf, w_bf, stride=STRIDE)
    assert out_bf16.shape == (N, C_out, L_out)
    assert jnp.max(jnp.abs(out_bf16 - ref_bf)) < 2e-3
    # sanity: bf16 path stays close to the full-precision reference (outputs normalized, O(1))
    assert jnp.max(jnp.abs(out_bf16 - ref)) < 1e-1

    print("KERNEL_OK")
</pallas_src>

<mosaic_0001>
module attributes {stable_mosaic.version = 11 : i64} {
  func.func @_unet_down_kernel(%arg0: i32, %arg1: memref<1x8x32xf32, #tpu.memory_space<vmem>>, %arg2: memref<8x16xf32, #tpu.memory_space<vmem>>, %arg3: memref<2x8x15xf32, #tpu.memory_space<vmem>>) attributes {dimension_semantics = [#tpu.dimension_semantics<parallel>], iteration_bounds = array<i64: 4>, scalar_prefetch = 0 : i64, scratch_operands = 0 : i64, tpu.core_type = #tpu.core_type<tc>, window_params = [{transform_indices = @transform_0, window_bounds = array<i64: 1, 8, 32>}, {pipeline_mode = #tpu.pipeline_mode<synchronous>, transform_indices = @transform_1, window_bounds = array<i64: 8, 16>}, {transform_indices = @transform_2, window_bounds = array<i64: 2, 8, 15>}]} {
    %c0 = arith.constant 0 : index
    %c0_0 = arith.constant 0 : index
    %c0_1 = arith.constant 0 : index
    %0 = vector.load %arg1[%c0, %c0_0, %c0_1] : memref<1x8x32xf32, #tpu.memory_space<vmem>>, vector<1x8x31xf32>
    %1 = vector.shape_cast %0 : vector<1x8x31xf32> to vector<8x31xf32>
    %c0_2 = arith.constant 0 : index
    %c0_3 = arith.constant 0 : index
    %c1 = arith.constant 1 : index
    %2 = vector.load %arg1[%c0_2, %c0_3, %c1] : memref<1x8x32xf32, #tpu.memory_space<vmem>>, vector<1x8x31xf32>
    %3 = vector.shape_cast %2 : vector<1x8x31xf32> to vector<8x31xf32>
    %4 = tpu.concatenate %1, %3 in 0 : vector<8x31xf32>, vector<8x31xf32> -> vector<16x31xf32>
    %c0_4 = arith.constant 0 : index
    %c0_5 = arith.constant 0 : index
    %5 = vector.load %arg2[%c0_4, %c0_5] : memref<8x16xf32, #tpu.memory_space<vmem>>, vector<8x16xf32>
    %cst = arith.constant dense<0.000000e+00> : vector<8x31xf32>
    %6 = tpu.matmul %5, %4, %cst {dimension_numbers = #tpu.dot_dimension_numbers<[1], [0], [0], [1], [0, 0, 1, 1], [], []>} : vector<8x16xf32>, vector<16x31xf32>, vector<8x31xf32> -> vector<8x31xf32>
    %7 = vector.extract_strided_slice %6 {offsets = [0, 0], sizes = [8, 15], strides = [1, 1]} : vector<8x31xf32> to vector<8x15xf32>
    %cst_6 = arith.constant dense<0.000000e+00> : vector<8xf32>
    %8 = vector.multi_reduction <add>, %7, %cst_6 [1] : vector<8x15xf32> to vector<8xf32>
    %9 = vector.shape_cast %8 : vector<8xf32> to vector<8x1xf32>
    %cst_7 = arith.constant 0.0666666701 : f32
    %10 = vector.broadcast %cst_7 : f32 to vector<8x1xf32>
    %11 = arith.mulf %9, %10 : vector<8x1xf32>
    %12 = vector.broadcast %11 : vector<8x1xf32> to vector<8x15xf32>
    %13 = arith.subf %7, %12 : vector<8x15xf32>
    %14 = arith.mulf %13, %13 : vector<8x15xf32>
    %cst_8 = arith.constant dense<0.000000e+00> : vector<8xf32>
    %15 = vector.multi_reduction <add>, %14, %cst_8 [1] : vector<8x15xf32> to vector<8xf32>
    %16 = vector.shape_cast %15 : vector<8xf32> to vector<8x1xf32>
    %cst_9 = arith.constant 0.0666666701 : f32
    %17 = vector.broadcast %cst_9 : f32 to vector<8x1xf32>
    %18 = arith.mulf %16, %17 : vector<8x1xf32>
    %cst_10 = arith.constant 9.99999974E-6 : f32
    %19 = vector.broadcast %cst_10 : f32 to vector<8x1xf32>
    %20 = arith.addf %18, %19 : vector<8x1xf32>
    %21 = math.rsqrt %20 : vector<8x1xf32>
    %22 = vector.broadcast %21 : vector<8x1xf32> to vector<8x15xf32>
    %23 = arith.mulf %13, %22 : vector<8x15xf32>
    %cst_11 = arith.constant 0.000000e+00 : f32
    %24 = vector.broadcast %cst_11 : f32 to vector<8x15xf32>
    %25 = arith.cmpf oge, %23, %24 : vector<8x15xf32>
    %cst_12 = arith.constant 2.000000e-01 : f32
    %26 = vector.broadcast %cst_12 : f32 to vector<8x15xf32>
    %27 = arith.mulf %26, %23 : vector<8x15xf32>
    %28 = arith.select %25, %23, %27 : vector<8x15xi1>, vector<8x15xf32>
    %c0_13 = arith.constant 0 : index
    %c0_14 = arith.constant 0 : index
    %c0_15 = arith.constant 0 : index
    %29 = vector.load %arg3[%c0_13, %c0_14, %c0_15] : memref<2x8x15xf32, #tpu.memory_space<vmem>>, vector<1x8x15xf32>
    %30 = vector.shape_cast %29 : vector<1x8x15xf32> to vector<8x15xf32>
    %31 = vector.shape_cast %28 : vector<8x15xf32> to vector<1x8x15xf32>
    tpu.vector_store %arg3[%c0_13, %c0_14, %c0_15], %31 {strides = array<i32>} : memref<2x8x15xf32, #tpu.memory_space<vmem>>, vector<1x8x15xf32>,
    %32 = vector.extract_strided_slice %6 {offsets = [0, 16], sizes = [8, 15], strides = [1, 1]} : vector<8x31xf32> to vector<8x15xf32>
    %cst_16 = arith.constant dense<0.000000e+00> : vector<8xf32>
    %33 = vector.multi_reduction <add>, %32, %cst_16 [1] : vector<8x15xf32> to vector<8xf32>
    %34 = vector.shape_cast %33 : vector<8xf32> to vector<8x1xf32>
    %cst_17 = arith.constant 0.0666666701 : f32
    %35 = vector.broadcast %cst_17 : f32 to vector<8x1xf32>
    %36 = arith.mulf %34, %35 : vector<8x1xf32>
    %37 = vector.broadcast %36 : vector<8x1xf32> to vector<8x15xf32>
    %38 = arith.subf %32, %37 : vector<8x15xf32>
    %39 = arith.mulf %38, %38 : vector<8x15xf32>
    %cst_18 = arith.constant dense<0.000000e+00> : vector<8xf32>
    %40 = vector.multi_reduction <add>, %39, %cst_18 [1] : vector<8x15xf32> to vector<8xf32>
    %41 = vector.shape_cast %40 : vector<8xf32> to vector<8x1xf32>
    %cst_19 = arith.constant 0.0666666701 : f32
    %42 = vector.broadcast %cst_19 : f32 to vector<8x1xf32>
    %43 = arith.mulf %41, %42 : vector<8x1xf32>
    %cst_20 = arith.constant 9.99999974E-6 : f32
    %44 = vector.broadcast %cst_20 : f32 to vector<8x1xf32>
    %45 = arith.addf %43, %44 : vector<8x1xf32>
    %46 = math.rsqrt %45 : vector<8x1xf32>
    %47 = vector.broadcast %46 : vector<8x1xf32> to vector<8x15xf32>
    %48 = arith.mulf %38, %47 : vector<8x15xf32>
    %cst_21 = arith.constant 0.000000e+00 : f32
    %49 = vector.broadcast %cst_21 : f32 to vector<8x15xf32>
    %50 = arith.cmpf oge, %48, %49 : vector<8x15xf32>
    %cst_22 = arith.constant 2.000000e-01 : f32
    %51 = vector.broadcast %cst_22 : f32 to vector<8x15xf32>
    %52 = arith.mulf %51, %48 : vector<8x15xf32>
    %53 = arith.select %50, %48, %52 : vector<8x15xi1>, vector<8x15xf32>
    %c1_23 = arith.constant 1 : index
    %c0_24 = arith.constant 0 : index
    %c0_25 = arith.constant 0 : index
    %54 = vector.load %arg3[%c1_23, %c0_24, %c0_25] : memref<2x8x15xf32, #tpu.memory_space<vmem>>, vector<1x8x15xf32>
    %55 = vector.shape_cast %54 : vector<1x8x15xf32> to vector<8x15xf32>
    %56 = vector.shape_cast %53 : vector<8x15xf32> to vector<1x8x15xf32>
    tpu.vector_store %arg3[%c1_23, %c0_24, %c0_25], %56 {strides = array<i32>} : memref<2x8x15xf32, #tpu.memory_space<vmem>>, vector<1x8x15xf32>,
    return
  }
  func.func @transform_0(%arg0: i32) -> (i32, i32, i32) {
    %c0_i32 = arith.constant 0 : i32
    %c0_i32_0 = arith.constant 0 : i32
    %c0_i32_1 = arith.constant 0 : i32
    return %arg0, %c0_i32, %c0_i32_0 : i32, i32, i32
  }
  func.func @transform_1(%arg0: i32) -> (i32, i32) {
    %c0_i32 = arith.constant 0 : i32
    %c0_i32_0 = arith.constant 0 : i32
    %c0_i32_1 = arith.constant 0 : i32
    return %c0_i32, %c0_i32_0 : i32, i32
  }
  func.func @transform_2(%arg0: i32) -> (i32, i32, i32) {
    %c0_i32 = arith.constant 0 : i32
    %c0_i32_0 = arith.constant 0 : i32
    %c0_i32_1 = arith.constant 0 : i32
    return %arg0, %c0_i32, %c0_i32_0 : i32, i32, i32
  }
}

</mosaic_0001>

<bundles_post_ra>
// kernel: tpu_custom_call.1
= control target key start
LH: loop header
LB: loop body
LE: loop exit
PB: predicated region body
PF: predicated region fallthrough
CT: control target
= control target key end

     0   :  { %7 = vsyncpa [#allocation3], 0  ;;  %s829_s0 = inlined_call_operand.hbm [shape: f32[4,8,32], index: 0, kind: input, shape index: {}]   ;;  %s830_s1 = inlined_call_operand.hbm [shape: f32[8,16], index: 1, kind: input, shape index: {}]   ;;  %s831_s2 = inlined_call_operand.hbm [shape: f32[8,8,15], index: 2, kind: output, shape index: {}]  }
   0x1   :  { %9 = vsyncpa [#allocation3 + $0x1], 0 }
   0x2   :  { %10 = vsyncpa [#allocation6], 0 }
   0x3   :  { %11 = vsyncpa [#allocation4], 0 }
   0x4   :  { %13 = vsyncpa [#allocation4 + $0x1], 0  ;;  %s641_s9 = smov 0   ;;  %s643_s10 = smov 0  }
   0x5   :  { %s645_s11 = smov 0   ;;  %s647_s12 = smov 0  }
   0x6 LB: > { %s662_s13 = sadd.s32 4294967295, %s615_s12   ;;  %s398_s14 = sadd.s32 4294967294, %s615_s12   ;;  %s615_s12 = sphi %s647_s12, %s853_s12   ;;  %s611_s11 = sphi %s645_s11, %s852_s11   ;;  %s607_s10 = sphi %s643_s10, %s851_s10   ;;  %s603_s9 = sphi %s641_s9, %s850_s9  }
   0x7   : > { %p39_p0 = scmp.ne.s32.totalorder %s607_s10, %s603_s9  ;;  %p832_p1 = scmp.eq.s32.totalorder %s662_s13, 0 }
   0x8   : > { %p90_p3 = scmp.eq.s32.totalorder %s398_s14, 3  ;;  %p399_p5 = scmp.ge.s32.totalorder %s615_s12, 1 }
   0x9   : > { %p671_p4 = por %p832_p1, %p39_p0  ;;  %p97_p7 = scmp.lt.s32.totalorder %s615_s12, 5 }
   0xa   : > { %p676_p6 = por %p90_p3, %p39_p0  ;;  %s617_s18 = smov [#allocation5]  }
   0xb   : > { %s836_s15 = scalar_select %p671_p4, 1, 0 }
   0xc   : > { %s837_s16 = scalar_select %p676_p6, 1, 0 }
   0xd   : > { %p681_p8 = pnand %p399_p5, %p97_p7  ;;  %s110_s19 = sshll.u32 %s617_s18, 4  ;;  %s111_s19 = int_to_ptr.vmem [resolvable:$true] %s110_s19 }
   0xe   : > { %s688_s20 = sadd.s32 1, %s615_s12   ;;  %s26_s24 = sadd.s32 1, %s611_s11 }
   0xf   : > { %s838_s17 = scalar_select %p681_p8, 1, 0 }
  0x10   : > { %p434_p9 = pneg %p681_p8  ;;  %s23_s22 = ssub.s32 %s615_s12, %s688_s20 }
  0x11   : > { %p698_p11 = scmp.eq.s32.totalorder %s23_s22, 0  ;;  %p33_p12 = scmp.ne.s32.totalorder %s611_s11, %s607_s10 }
  0x12   : > { %p692_p10 = pnand %p434_p9, %p832_p1  ;;  %s504_s25 = scalar_lea.vmem %s111_s19, 128 }
  0x13   : > { %p505_p0 = scmp.ne.s32.totalorder %s111_s19, %s504_s25  ;;  %p512_p7 = scmp.lt.s32.totalorder %s111_s19, %s111_s19 }
  0x14   : > { %p495_p13 = pneg %p692_p10  ;;  %p513_p2 = scmp.lt.s32.totalorder %s504_s25, %s504_s25 }
  0x16   : > { %p507_p3 = pnand %p505_p0, %p495_p13  ;;  %p514_p9 = por %p513_p2, %p512_p7 }
  0x18   : > { %p508_p5 = pneg %p507_p3 }
  0x1a   : > { %p515_p1 = pnand %p514_p9, %p508_p5 }
  0x1c   : > { %518 = shalt.err (!%p515_p1)
}
  0x1d   : > { %437 = dma.hbm_to_vmem [thread:$0]  (!%p692_p10), %s830_s1, 128, %s111_s19, [#allocation6]  }
  0x1e   : > { %s715_s28 = scalar_select %p698_p11, %s611_s11, %s26_s24  }
  0x1f   : > { %p34_p1 = scmp.eq.s32.totalorder %s615_s12, 0  ;;  %p841_p2 = scmp.eq.s32.totalorder %s662_s13, 3 }
  0x20   : > { %p447_p0 = scmp.lt.s32.totalorder %s615_s12, 4  ;;  %s121_s30 = sand.u32 1, %s611_s11  }
  0x21   : > { %p723_p13 = por %p841_p2, %p33_p12  ;;  %p35_p3 = por %p34_p1, %p33_p12 }
  0x22   : > { %s402_s3 = sshll.u32 %s121_s30, 3  ;;  %s403_s4 = sshll.u32 %s615_s12, 7 }
  0x23   : > { %s842_s29 = scalar_select %p723_p13, 1, 0 }
  0x24   : > { %s736_s7 = scalar_lea.hbm %s829_s0, %s403_s4  ;;  %s125_s8 = scalar_lea.vmem [#allocation2], %s402_s3 }
  0x25   : > { %s132_s14 = sshll.u32 %s125_s8, 4  ;;  %p738_p10 = pnand %p447_p0, %p35_p3  ;;  %s133_s14 = int_to_ptr.vmem [resolvable:$true] %s132_s14 }
  0x26   : > { %s122_s19 = scalar_lea.sflag [#allocation3], %s121_s30  ;;  %s519_s21 = scalar_lea.hbm %s736_s7, 128 }
  0x27   : > { %p520_p11 = scmp.ne.s32.totalorder %s736_s7, %s519_s21  ;;  %p521_p12 = pneg %p738_p10 }
  0x28   : > { %s524_s24 = scalar_lea.hbm %s829_s0, 512  ;;  %p525_p9 = scmp.lt.s32.totalorder %s736_s7, %s829_s0 }
  0x29   : > { %p522_p5 = pnand %p521_p12, %p520_p11  ;;  %p526_p1 = scmp.lt.s32.totalorder %s524_s24, %s519_s21 }
  0x2b   : > { %p523_p7 = pneg %p522_p5  ;;  %p527_p2 = por %p526_p1, %p525_p9 }
  0x2d   : > { %p528_p0 = pnand %p527_p2, %p523_p7 }
  0x2f   : > { %531 = shalt.err (!%p528_p0)
}
  0x30   : > { %s532_s27 = scalar_lea.vmem %s133_s14, 128  ;;  %s618_s30 = smov [#allocation2]  }
  0x31   : > { %p533_p3 = scmp.ne.s32.totalorder %s133_s14, %s532_s27  ;;  %s537_s3 = sshll.u32 %s618_s30, 4  ;;  %s538_s3 = int_to_ptr.vmem [resolvable:$false] %s537_s3 }
  0x32   : > { %s539_s4 = scalar_lea.vmem %s538_s3, 256  ;;  %p540_p11 = scmp.lt.s32.totalorder %s133_s14, %s538_s3 }
  0x33   : > { %p535_p6 = pnand %p533_p3, %p521_p12  ;;  %p541_p5 = scmp.lt.s32.totalorder %s539_s4, %s532_s27 }
  0x35   : > { %p536_p13 = pneg %p535_p6  ;;  %p542_p4 = por %p541_p5, %p540_p11 }
  0x37   : > { %p543_p8 = pnand %p542_p4, %p536_p13 }
  0x39   : > { %546 = shalt.err (!%p543_p8)
}
  0x3a   : > { %441 = dma.hbm_to_vmem [thread:$0]  (!%p738_p10), %s736_s7, 128, %s133_s14, %s122_s19  }
  0x3b   : > { %p844_p7 = scmp.ne.s32.totalorder %s838_s17, 0 }
  0x3c   : > { %s759_s5 = sand.u32 (!%p844_p7), 1, %s607_s10   ;;  %p845_p6 = scmp.ne.s32.totalorder (!%p844_p7), %s836_s15, 0 }
  0x3d   : > { %141 = sbr.rel (%p844_p7) target bundleno = 1049 (0x419), region = 28  ;;  %s405_s6 = sshll.u32 (!%p844_p7), %s759_s5, 3 }
  0x3e   : > { %s144_s8 = scalar_lea.sflag (!%p844_p7), [#allocation3], %s759_s5  ;;  %s147_s21 = scalar_lea.vmem (!%p844_p7), [#allocation2], %s405_s6 }
  0x42   : > { %590 = dma.done.wait (%p845_p6), %s144_s8, 128  }
  0x43   : > { %592 = vsyncadd (%p845_p6), %s144_s8, 4294967168  ;;  %p846_p4 = scmp.eq.s32.totalorder %s662_s13, 0 }
  0x45   : > { %594 = dma.done.wait (%p846_p4), [#allocation6], 128   ;;  %p847_p8 = pmov %p846_p4 }
  0x46   : > { %v619_v0 = vmov 0.0   ;;  %vm620_vm0 = vmmov 0   ;;  %v173_v1 = vld [vmem:[%s147_s21] sm:$0xff]  ;;  %s621_s17 = smov 127   ;;  %v178_v3 = vld [vmem:[#allocation5] sm:$0xff]  ;;  %vm179_vm1 = vcmask 130048  }
  0x47   : > { %596 = vsyncadd (%p847_p8), [#allocation6], 4294967168  ;;  %419 = vmatprep.subr.mxu0 %v619_v0  ;;  %423 = vmatprep.mubr.msk.f32.mxu0 %vm620_vm0, %v619_v0  ;;  %s622_s15 = smov 112   ;;  %vm253_vm2 = vcmask 121856   ;;  %s407_s7 = sshll.u32 %s759_s5, 4 }
  0x48   : > { %175 = vrot.lane.b32.xlu0 %v173_v1, %s621_s17  ;;  %s171_s14 = scalar_lea.vmem [#allocation7], %s407_s7  ;;  %s415_s19 = sshll.u32 %s662_s13, 8 }
  0x49   : > { %s315_s18 = sshll.u32 %s171_s14, 4  ;;  %s786_s24 = scalar_lea.hbm %s831_s2, %s415_s19  ;;  %s781_s18 = int_to_ptr.vmem [resolvable:$true] %s315_s18 }
  0x4a   : > { %s302_s25 = scalar_lea.sflag [#allocation4], %s759_s5  ;;  %s547_s26 = scalar_lea.vmem %s781_s18, 256 }
  0x4b   : > { %p548_p13 = scmp.ne.s32.totalorder %s781_s18, %s547_s26  ;;  %p848_p10 = scmp.ne.s32.totalorder %s842_s29, 0 }
  0x4c   : > { %s623_s13 = smov [#allocation7]  }
  0x4d   : > { %p549_p12 = pnand %p548_p13, %p848_p10  ;;  %s551_s27 = sshll.u32 %s623_s13, 4  ;;  %s552_s27 = int_to_ptr.vmem [resolvable:$false] %s551_s27 }
  0x4e   : > { %s553_s30 = scalar_lea.vmem %s552_s27, 512  ;;  %p554_p1 = scmp.lt.s32.totalorder %s781_s18, %s552_s27 }
  0x4f   : > { %p550_p9 = pneg %p549_p12  ;;  %p555_p2 = scmp.lt.s32.totalorder %s553_s30, %s547_s26 }
  0x51   : > { %p556_p0 = por %p555_p2, %p554_p1 }
  0x53   : > { %p557_p3 = pnand %p556_p0, %p550_p9 }
  0xba   : > { %v176_v2 = vpop.permute.xlu0 %175 }
  0xbb   : > { %420 = vmatpush3.msra.mxu0 %v176_v2 }
  0xbc   : > { %421 = vmatprep.subr.mxu0 %v619_v0 }
  0xbd   : > { %422 = vmatpush3.msra.mxu0 %v173_v1 }
  0xbe   : > { %424 = vmatmul.mubr.msk.f32.vlgmr.msra.gmra.mxu0 %vm179_vm1, %v178_v3 }
 0x17e   : > { %v249_v4 = vpop.f32.mrf.mxu0 }
 0x17f   : > { %272 = vrot.lane.b32.xlu0 %v249_v4, %s622_s15  ;;  %v254_v6 = vsel %vm253_vm2, %v249_v4, 0.0 }
 0x180   : > { %v425_v5 = vpop.f32.mrf.mxu0 }
 0x19e   : > { %255 = vadd.xlane.f32.xlu0 %v254_v6 }
 0x1f1   : > { %v273_v7 = vpop.permute.xlu0 %272 }
 0x1f2   : > { %v275_v8 = vsel %vm253_vm2, %v273_v7, 0.0 }
 0x1f3   : > { %276 = vadd.xlane.f32.xlu1 %v275_v8 }
 0x227   : > { %v256_v9 = vpop.xlane.xlu0 %255 }
 0x228   : > { %v257_v10 = vmul.f32 0.06666667, %v256_v9 }
 0x22a   : > { %v258_v11 = vsub.f32 %v249_v4, %v257_v10 }
 0x22c   : > { %v259_v12 = vmul.f32 %v258_v11, %v258_v11 }
 0x22e   : > { %v260_v13 = vsel %vm253_vm2, %v259_v12, 0.0 }
 0x22f   : > { %261 = vadd.xlane.f32.xlu0 %v260_v13 }
 0x27c   : > { %v277_v14 = vpop.xlane.xlu1 %276 }
 0x27d   : > { %v278_v15 = vmul.f32 0.06666667, %v277_v14 }
 0x27f   : > { %v279_v16 = vsub.f32 %v249_v4, %v278_v15 }
 0x281   : > { %v280_v17 = vmul.f32 %v279_v16, %v279_v16 }
 0x283   : > { %282 = vrot.lane.b32.xlu1 %v280_v17, %s622_s15 }
 0x2b8   : > { %v262_v18 = vpop.xlane.xlu0 %261 }
 0x2b9   : > { %v263_v19 = vmul.f32 0.06666667, %v262_v18 }
 0x2bb   : > { %v264_v20 = vadd.f32 1e-05, %v263_v19 }
 0x2bd   : > { %489 = vrsqrt.f32 %v264_v20 }
 0x2ca   : > { %v490_v21 = vpop.eup %489 }
 0x2cb   : > { %v266_v22 = vmul.f32 %v490_v21, %v258_v11 }
 0x2cd   : > { %vm267_vm3 = vcmp.ge.f32.partialorder %v266_v22, 0.0  ;;  %v268_v23 = vmul.f32 0.2, %v266_v22 }
 0x2cf   : > { %v269_v24 = vsel %vm267_vm3, %v266_v22, %v268_v23 }
 0x2d0   : > { %270 = vst.msk [vmem:[%s171_s14] sm:$0xff] %vm253_vm2, %v269_v24 }
 0x2f5   : > { %v283_v25 = vpop.permute.xlu1 %282 }
 0x2f6   : > { %v285_v26 = vsel %vm253_vm2, %v283_v25, 0.0 }
 0x2f7   : > { %286 = vadd.xlane.f32.xlu1 %v285_v26 }
 0x380   : > { %v287_v27 = vpop.xlane.xlu1 %286 }
 0x381   : > { %v288_v28 = vmul.f32 0.06666667, %v287_v27 }
 0x383   : > { %v289_v29 = vadd.f32 1e-05, %v288_v28 }
 0x385   : > { %491 = vrsqrt.f32 %v289_v29 }
 0x392   : > { %v492_v30 = vpop.eup %491 }
 0x393   : > { %v291_v31 = vmul.f32 %v492_v30, %v279_v16 }
 0x395   : > { %vm292_vm4 = vcmp.ge.f32.partialorder %v291_v31, 0.0  ;;  %v293_v32 = vmul.f32 0.2, %v291_v31 }
 0x397   : > { %v294_v33 = vsel %vm292_vm4, %v291_v31, %v293_v32 }
 0x398   : > { %296 = vrot.lane.b32.xlu0 %v294_v33, %s622_s15 }
 0x40a   : > { %v297_v34 = vpop.permute.xlu0 %296 }
 0x40b   : > { %409 = vst.msk [vmem:[%s171_s14 + $0x8] sm:$0xff] %vm253_vm2, %v297_v34 }
 0x40c   : > { %560 = shalt.err (!%p557_p3)
}
 0x40d   : > { %s561_s3 = scalar_lea.hbm %s786_s24, 256  ;;  %s565_s8 = scalar_lea.hbm %s831_s2, 1024 }
 0x40e   : > { %p562_p11 = scmp.ne.s32.totalorder %s786_s24, %s561_s3  ;;  %p566_p6 = scmp.lt.s32.totalorder %s786_s24, %s831_s2 }
 0x40f   : > { %p567_p4 = scmp.lt.s32.totalorder %s565_s8, %s561_s3 }
 0x410   : > { %p563_p5 = pnand %p562_p11, %p848_p10 }
 0x411   : > { %p568_p8 = por %p567_p4, %p566_p6 }
 0x412   : > { %p564_p7 = pneg %p563_p5 }
 0x414   : > { %p569_p13 = pnand %p568_p8, %p564_p7 }
 0x416   : > { %572 = shalt.err (!%p569_p13)
}
 0x417   : > { %s624_s15 = smov 128   ;;  %s625_s7 = smov 8  }
 0x418   : > { %432 = dma.vmem_to_hbm [thread:$0]  (%p848_p10), %s781_s18, 256, %s786_s24, %s302_s25, %s624_s15, %s624_s15, %s625_s7  }
 0x419 PF: > { %p449_p12 = scmp.ge.s32.totalorder %s615_s12, 2  ;;  %s330_s14 = sand.u32 1, %s603_s9  }
 0x41a   : > { %p849_p9 = scmp.ne.s32.totalorder %s837_s16, 0  ;;  %s331_s19 = scalar_lea.sflag [#allocation4], %s330_s14 }
 0x41c   : > { %p443_p1 = pnand %p449_p12, %p849_p9 }
 0x41e   : > { %p444_p2 = pneg %p443_p1 }
 0x420   : > { %598 = dma.done.wait (%p444_p2), %s331_s19, 256  }
 0x421   : > { %600 = vsyncadd (%p444_p2), %s331_s19, 4294967040  ;;  %p16_p0 = scmp.ge.s32.totalorder %s688_s20, 6   ;;  %s850_s9 = smov %s607_s10 }
 0x422   : > { %s851_s10 = smov %s611_s11  ;;  %s852_s11 = smov %s715_s28 }
 0x423   : > { %s853_s12 = smov %s688_s20  ;;  %18 = sbr.rel (!%p16_p0) target bundleno = 6 (0x6), region = 78 }
 0x428   :  { %336 = vsyncpa [#allocation3], 1 }
 0x429   :  { %338 = vsyncpa [#allocation3 + $0x1], 1 }
 0x42a   :  { %339 = vsyncpa [#allocation6], 1 }
 0x42b   :  { %340 = vsyncpa [#allocation4], 1 }
 0x42c   :  { %342 = vsyncpa [#allocation4 + $0x1], 1 }

</bundles_post_ra>
